<compile_context>
chip_gen: v7x
topology: tpu7x:2x2x1
jax: 0.10.0
libtpu: 0.0.40
codegen_flags: <defaults>
</compile_context>

<pallas_src>
import functools

import numpy as np
import jax
import jax.numpy as jnp
from jax import lax
from jax.experimental import pallas as pl
from jax.experimental.pallas import tpu as pltpu


_ROW_TILE_TARGET = 1024      # target flat output rows (Ho-rows * Wp) per conv grid step


def _round_up(v, m):
    return ((v + m - 1) // m) * m


@functools.lru_cache(maxsize=None)
def _vmem_limit():
    """Generation-aware scoped-VMEM budget (review: don't hand v7x its whole 64 MiB)."""
    try:
        info = pltpu.get_tpu_info()
        cap = getattr(info, "vmem_capacity_bytes", None)
        if cap:
            return int(min(max(cap - 16 * 1024 * 1024, cap * 3 // 4),
                           100 * 1024 * 1024))
    except Exception:
        pass
    return 48 * 1024 * 1024


# ----------------------------------------------------------------------------
# Capability probe: does pltpu.roll follow jnp.roll semantics on a bf16 sublane axis?
# (Explicit check instead of a try/except around the real kernels.)
# ----------------------------------------------------------------------------
_ROLL_OK = None


def _probe_roll():
    m = 32

    def k(x_ref, o_ref):
        o_ref[...] = pltpu.roll(x_ref[...], shift=m - 1, axis=0)

    try:
        x = jnp.arange(m * 128, dtype=jnp.float32).reshape(m, 128).astype(jnp.bfloat16)
        got = pl.pallas_call(k, out_shape=jax.ShapeDtypeStruct((m, 128), jnp.bfloat16))(x)
        return bool(jnp.array_equal(got, jnp.roll(x, -1, axis=0)))
    except Exception:
        return False


def _use_roll():
    global _ROLL_OK
    if _ROLL_OK is None:
        _ROLL_OK = _probe_roll()
    return _ROLL_OK


# ----------------------------------------------------------------------------
# STFT magnitude kernel:  mag[bin, frame] for one (batch, frame-tile, bin-tile) block.
# Frames are stored time-major (B, n_fft, F_pad) so the matmul output is already in
# (bins, frames) layout — no host transpose afterwards.
# ----------------------------------------------------------------------------
def _stft_mag_kernel(f_ref, basis_ref, o_ref, *, tile_n):
    # basis_ref: (2*tile_n, n_fft)  [windowed cos rows | -windowed sin rows]
    # f_ref:     (1, n_fft, tile_m)
    z = jnp.dot(basis_ref[...], f_ref[0], preferred_element_type=jnp.float32)
    re = z[:tile_n]
    im = z[tile_n:]
    o_ref[0] = jnp.sqrt(jnp.maximum(re * re + im * im, 1e-7)).astype(o_ref.dtype)


def _dft_basis(fft_size, win_length, nbins_pad, tile_n):
    n = np.arange(win_length)
    win = 0.5 - 0.5 * np.cos(2.0 * np.pi * n / win_length)   # periodic hann (torch default)
    win_full = np.zeros(fft_size, dtype=np.float64)
    lpad = (fft_size - win_length) // 2
    win_full[lpad:lpad + win_length] = win                    # torch.stft centers short windows
    nbins = fft_size // 2 + 1
    k = np.arange(nbins_pad)[:, None]
    t = np.arange(fft_size)[None, :]
    ang = 2.0 * np.pi * k * t / fft_size
    valid = (k < nbins)
    cos_r = np.where(valid, win_full[None, :] * np.cos(ang), 0.0)
    sin_r = np.where(valid, -win_full[None, :] * np.sin(ang), 0.0)
    blocks = []
    for j in range(nbins_pad // tile_n):
        blocks.append(cos_r[j * tile_n:(j + 1) * tile_n])
        blocks.append(sin_r[j * tile_n:(j + 1) * tile_n])
    basis = np.concatenate(blocks, axis=0).astype(np.float32)   # (2*nbins_pad, n_fft)
    return jnp.asarray(basis, jnp.bfloat16)


def stft_magnitude(frames, basis, nbins_pad, tile_n, tile_m):
    B, n_fft, F_pad = frames.shape
    grid = (B, F_pad // tile_m, nbins_pad // tile_n)
    return pl.pallas_call(
        functools.partial(_stft_mag_kernel, tile_n=tile_n),
        out_shape=jax.ShapeDtypeStruct((B, nbins_pad, F_pad), jnp.bfloat16),
        grid=grid,
        in_specs=[
            pl.BlockSpec((1, n_fft, tile_m), lambda b, i, j: (b, 0, i)),
            pl.BlockSpec((2 * tile_n, n_fft), lambda b, i, j: (j, 0)),
        ],
        out_specs=pl.BlockSpec((1, tile_n, tile_m), lambda b, i, j: (b, j, i)),
        compiler_params=pltpu.CompilerParams(
            dimension_semantics=("parallel", "parallel", "parallel"),
            vmem_limit_bytes=_vmem_limit()),
    )(frames, basis)


def stft_spec(x16, fft_size, hop_size, win_length):
    """x16: (B, T) bf16 -> (spec (B, nbins_pad, F_pad) bf16, num_frames, nbins)."""
    B, T = x16.shape
    pad = fft_size // 2
    xp = jnp.pad(x16, ((0, 0), (pad, pad)), mode="reflect")
    num_frames = (T + 2 * pad - fft_size) // hop_size + 1
    nbins = fft_size // 2 + 1
    nbins_pad = _round_up(nbins, 128)
    tile_n = 256 if nbins_pad % 256 == 0 else 128
    tile_m = 128 if num_frames <= 256 else (256 if num_frames <= 1024 else 512)
    F_pad = _round_up(num_frames, tile_m)
    # TODO(synk): replace this constant-index gather (duplicates the signal ~fft/hop x
    # in HBM) with hop-phase slicing or in-kernel framing via element-offset blocks.
    starts = np.minimum(np.arange(F_pad), num_frames - 1) * hop_size
    idx = np.arange(fft_size)[:, None] + starts[None, :]          # (n_fft, F_pad)
    frames = xp[:, idx]                                            # (B, n_fft, F_pad)
    basis = _dft_basis(fft_size, win_length, nbins_pad, tile_n)
    mag = stft_magnitude(frames, basis, nbins_pad, tile_n, tile_m)
    return mag, num_frames, nbins


# ----------------------------------------------------------------------------
# Conv2d + bias (+ LeakyReLU(0.2)) — row-tiled direct conv, stride folded to 1
# ----------------------------------------------------------------------------
def _conv_kernel(x_ref, w_ref, b_ref, o_ref, *, A, Wp, m_out, alpha, fold_taps,
                 use_roll):
    """One (batch, output-row-tile) block.

    x_ref: (1, m_in, c_k) bf16  flattened folded rows (halo included unless fold_taps)
    w_ref: (T,  c_k, cout_pad) bf16   T = A*A (per-tap) or 1 (taps folded into c_k)
    b_ref: (1, cout_pad) f32
    o_ref: (1, m_out, cout_pad) bf16
    """
    x = x_ref[0]
    if fold_taps:
        acc = jnp.dot(x, w_ref[0], preferred_element_type=jnp.float32)
    else:
        m_in = x.shape[0]
        acc = None
        for aw in range(A):
            if use_roll and aw > 0:
                # Sublane rotate (XLU) so the per-ah slices below stay tile-aligned
                # (Wp is a multiple of 16); equivalent to x shifted up by `aw` rows.
                xs = pltpu.roll(x, shift=m_in - aw, axis=0)
                base = 0
            else:
                xs, base = x, aw
            for ah in range(A):
                off = ah * Wp + base
                part = jnp.dot(xs[off:off + m_out, :], w_ref[ah * A + aw],
                               preferred_element_type=jnp.float32)
                acc = part if acc is None else acc + part
    acc = acc + b_ref[...]
    if alpha is not None:
        acc = jnp.where(acc >= 0.0, acc, alpha * acc)
    o_ref[0] = acc.astype(o_ref.dtype)


def _conv_pallas(x, w, b, *, A, Wp, tr, alpha):
    G, m_in, c_k = x.shape
    T, _, cout_pad = w.shape
    m_out = tr * Wp
    kern = functools.partial(_conv_kernel, A=A, Wp=Wp, m_out=m_out, alpha=alpha,
                             fold_taps=(T == 1), use_roll=_use_roll())
    return pl.pallas_call(
        kern,
        out_shape=jax.ShapeDtypeStruct((G, m_out, cout_pad), jnp.bfloat16),
        grid=(G,),
        in_specs=[
            pl.BlockSpec((1, m_in, c_k), lambda g: (g, 0, 0)),
            pl.BlockSpec((T, c_k, cout_pad), lambda g: (0, 0, 0)),
            pl.BlockSpec((1, cout_pad), lambda g: (0, 0)),
        ],
        out_specs=pl.BlockSpec((1, m_out, cout_pad), lambda g: (g, 0, 0)),
        compiler_params=pltpu.CompilerParams(
            dimension_semantics=("parallel",),      # batch x row-tiles -> megacore work
            vmem_limit_bytes=_vmem_limit()),
    )(x, w, b)


def _prepare_conv_input(a, h_true, w_true, c_real, p):
    """Slice to true extents, pad, space-to-depth fold, and cut haloed row windows.

    Returns x_tiles (N*n_tiles, rows*Wp, c_k) bf16 plus layer geometry.
    """
    # TODO(synk): fuse this pad / stride-fold / window pass into the producing conv's
    # out_spec (write the folded layout directly from the kernel) to save one HBM pass.
    N = a.shape[0]
    K, s, pad, A = p["k"], p["stride"], p["pad"], p["A"]
    fold_taps, c_k = p["fold_taps"], p["c_k"]
    Ho = (h_true + 2 * pad - K) // s + 1
    Wo = (w_true + 2 * pad - K) // s + 1
    c_eff = s * s * c_real
    Wp = _round_up(Wo if fold_taps else Wo + A - 1, 16)
    tr = max(1, min(Ho, _ROW_TILE_TARGET // Wp))
    n_tiles = -(-Ho // tr)
    Ho_pad = n_tiles * tr
    Hp = Ho_pad + A
    Wimg = Wp + (A - 1 if fold_taps else 0)

    x = a[:, :h_true, :w_true, :c_real]
    x = jnp.pad(x, ((0, 0),
                    (pad, Hp * s - pad - h_true),
                    (pad, Wimg * s - pad - w_true),
                    (0, 0)))
    if s > 1:   # space-to-depth: fold stride phases into channels
        x = x.reshape(N, Hp, s, Wimg, s, c_real)
        x = jnp.transpose(x, (0, 1, 3, 2, 4, 5))
    x = x.reshape(N, Hp, Wimg, c_eff)

    if fold_taps:
        # Small-channel layer: fold all A*A taps into the contraction dim.
        x = jnp.concatenate(
            [x[:, ah:ah + Ho_pad, aw:aw + Wp, :]
             for ah in range(A) for aw in range(A)], axis=-1)      # (N, Ho_pad, Wp, c_k)
        x = x.reshape(N, n_tiles, tr, Wp, c_k)
        rows = tr
    else:
        if c_k > c_eff:
            x = jnp.pad(x, ((0, 0), (0, 0), (0, 0), (0, c_k - c_eff)))
        rows = tr + A
        x = jnp.stack([x[:, i * tr:i * tr + rows] for i in range(n_tiles)], axis=1)
        # (N, n_tiles, tr+A, Wp, c_k) — overlapping row windows carry the halo.
    x = x.reshape(N * n_tiles, rows * Wp, c_k).astype(jnp.bfloat16)
    return x, Ho, Wo, Wp, tr, n_tiles


def nlayer_forward(params, spec, nbins, num_frames):
    """spec: (B, nbins_pad, F_pad) bf16.  Returns list of (act, Ho, Wo, cout)."""
    feats = []
    a = spec[:, :, :, None]                # NHWC: (B, bins, frames, 1)
    h, w, c = nbins, num_frames, 1
    N = a.shape[0]
    for p in params:
        x, Ho, Wo, Wp, tr, n_tiles = _prepare_conv_input(a, h, w, c, p)
        out = _conv_pallas(x, p["w"], p["b"], A=p["A"], Wp=Wp, tr=tr,
                           alpha=0.2 if p["act"] else None)
        a = out.reshape(N, n_tiles * tr, Wp, p["cout_pad"])
        h, w, c = Ho, Wo, p["cout"]
        feats.append((a, h, w, c))
    return feats


# ----------------------------------------------------------------------------
# Parameters (deterministic synthetic init; weight_norm is identity at init).
# Weights are repacked for the kernel: space-to-depth folded taps, true-channel
# contraction, lane-padded cout, bf16.  Raw HWIO f32 copies are kept for the
# pure-JAX reference check.
# ----------------------------------------------------------------------------
def build_nlayer_params(key, in_channels=1, out_channels=1, kernel_sizes=(7, 3),
                        channels=32, max_downsample_channels=512,
                        downsample_scales=(2, 2, 2)):
    assert kernel_sizes[0] % 2 == 1 and kernel_sizes[1] % 2 == 1
    cfgs = [dict(k=kernel_sizes[0], stride=2, cin=in_channels, cout=channels, act=True)]
    in_chs = channels
    for ds in downsample_scales:
        out_chs = min(in_chs * ds, max_downsample_channels)
        cfgs.append(dict(k=ds * 2 + 1, stride=ds, cin=in_chs, cout=out_chs, act=True))
        in_chs = out_chs
    out_chs = min(in_chs * 2, max_downsample_channels)
    cfgs.append(dict(k=kernel_sizes[1], stride=1, cin=in_chs, cout=out_chs, act=True))
    cfgs.append(dict(k=kernel_sizes[1], stride=1, cin=out_chs, cout=out_channels,
                     act=False))

    params = []
    for cfg in cfgs:
        key, wk, bk = jax.random.split(key, 3)
        K, s, cin, cout = cfg["k"], cfg["stride"], cfg["cin"], cfg["cout"]
        w = 0.02 * jax.random.normal(wk, (K, K, cin, cout), jnp.float32)    # HWIO
        b = 0.02 * jax.random.normal(bk, (cout,), jnp.float32)
        A = -(-K // s)
        c_eff = s * s * cin
        fold_taps = c_eff < 128
        cout_pad = _round_up(cout, 128)
        c_k = A * A * c_eff if fold_taps else _round_up(c_eff, 128)
        # Fold stride phases into channels: wp[ah*A+aw, (rh*s+rw)*cin + ch, co]
        #                                    = w[ah*s+rh, aw*s+rw, ch, co]
        w_np = np.asarray(w)
        wp = np.zeros((A * s, A * s, cin, cout), np.float32)
        wp[:K, :K] = w_np
        wp = wp.reshape(A, s, A, s, cin, cout).transpose(0, 2, 1, 3, 4, 5)
        wp = wp.reshape(A * A, c_eff, cout)
        if fold_taps:
            w_k = np.zeros((1, c_k, cout_pad), np.float32)
            w_k[0, :, :cout] = wp.reshape(A * A * c_eff, cout)
        else:
            w_k = np.zeros((A * A, c_k, cout_pad), np.float32)
            w_k[:, :c_eff, :cout] = wp
        b_k = np.zeros((1, cout_pad), np.float32)
        b_k[0, :cout] = np.asarray(b)
        params.append(dict(k=K, stride=s, pad=K // 2, A=A, cin=cin, cout=cout,
                           cout_pad=cout_pad, c_k=c_k, fold_taps=fold_taps,
                           act=cfg["act"],
                           w=jnp.asarray(w_k, jnp.bfloat16),
                           b=jnp.asarray(b_k, jnp.float32),
                           w_raw=w, b_raw=b))
    return params


def spec_discriminator_forward(all_disc_params, stft_params, x):
    """x: (B, 1, T) f32 -> list over STFT scales of lists of NCHW f32 feature maps."""
    x16 = x[:, 0, :].astype(jnp.bfloat16)   # squeeze(1); bf16 data, f32 MXU accumulation
    results = []
    for i, disc_params in enumerate(all_disc_params):
        spec, num_frames, nbins = stft_spec(
            x16, stft_params["fft_sizes"][i], stft_params["hop_sizes"][i],
            stft_params["win_lengths"][i])
        feats = nlayer_forward(disc_params, spec, nbins, num_frames)
        results.append([
            jnp.transpose(a[:, :h, :w, :c], (0, 3, 1, 2)).astype(jnp.float32)
            for (a, h, w, c) in feats
        ])
    return results


# ----------------------------------------------------------------------------
# Pure-JAX f32 reference (for the in-script correctness check)
# ----------------------------------------------------------------------------
def _reference_scale(params, x_f32, fft_size, hop_size, win_length):
    B, T = x_f32.shape
    pad = fft_size // 2
    xp = jnp.pad(x_f32, ((0, 0), (pad, pad)), mode="reflect")
    num_frames = (T + 2 * pad - fft_size) // hop_size + 1
    idx = np.arange(num_frames)[:, None] * hop_size + np.arange(fft_size)[None, :]
    frames = xp[:, idx]                                   # (B, frames, fft)
    n = np.arange(win_length)
    win = 0.5 - 0.5 * np.cos(2.0 * np.pi * n / win_length)
    wfull = np.zeros(fft_size)
    lp = (fft_size - win_length) // 2
    wfull[lp:lp + win_length] = win
    z = jnp.fft.rfft(frames * jnp.asarray(wfull, jnp.float32)[None, None, :], axis=-1)
    mag = jnp.sqrt(jnp.maximum(jnp.real(z) ** 2 + jnp.imag(z) ** 2, 1e-7))
    a = jnp.transpose(mag, (0, 2, 1))[:, :, :, None]      # NHWC (B, bins, frames, 1)
    feats = []
    for p in params:
        s = p["stride"]
        y = lax.conv_general_dilated(
            a, p["w_raw"], window_strides=(s, s),
            padding=((p["pad"], p["pad"]), (p["pad"], p["pad"])),
            dimension_numbers=("NHWC", "HWIO", "NHWC"))
        y = y + p["b_raw"][None, None, None, :]
        if p["act"]:
            y = jnp.where(y >= 0, y, 0.2 * y)
        feats.append(jnp.transpose(y, (0, 3, 1, 2)))      # NCHW
        a = y
    return feats


# ----------------------------------------------------------------------------
if __name__ == "__main__":
    # Small STFT params (same structure as the default 1024/2048/512 config,
    # scaled down so the demo input stays tiny).
    stft_params = {
        "fft_sizes": [64, 128, 32],
        "hop_sizes": [16, 32, 8],
        "win_lengths": [32, 64, 16],
        "window": "hann_window",
    }

    pkey = jax.random.PRNGKey(42)
    all_disc_params = []
    for _ in range(len(stft_params["fft_sizes"])):
        pkey, sub = jax.random.split(pkey)
        all_disc_params.append(
            build_nlayer_params(sub, in_channels=1, out_channels=1, kernel_sizes=(7, 3),
                                channels=32, max_downsample_channels=512,
                                downsample_scales=(2, 2, 2)))

    # Input waveform: (batch=2, channels=1, T=256)
    x = jax.random.normal(jax.random.PRNGKey(0), (2, 1, 256), jnp.float32)

    results = spec_discriminator_forward(all_disc_params, stft_params, x)
    for leaf in jax.tree_util.tree_leaves(results):
        jax.block_until_ready(leaf)

    # Structural sanity (matches the PyTorch arithmetic for fft=64 -> 33 bins, 17 frames)
    assert len(results) == 3 and all(len(r) == 6 for r in results)
    assert all(r[-1].shape[1] == 1 for r in results)
    assert results[0][0].shape == (2, 32, 17, 9)
    assert results[0][-1].shape == (2, 1, 3, 2)
    assert all(bool(jnp.isfinite(f).all()) for r in results for f in r)

    # Numerical check vs. a pure-JAX f32 reference (scale 0, all layers).
    ref_feats = _reference_scale(all_disc_params[0], x[:, 0, :].astype(jnp.float32),
                                 stft_params["fft_sizes"][0],
                                 stft_params["hop_sizes"][0],
                                 stft_params["win_lengths"][0])
    for layer_idx, (got, ref) in enumerate(zip(results[0], ref_feats)):
        err = float(jnp.max(jnp.abs(got - ref)))
        scale = float(jnp.max(jnp.abs(ref)))
        assert err <= 0.08 * scale + 2e-3, (layer_idx, err, scale)

    print("KERNEL_OK")
</pallas_src>

<mosaic_0001>
module attributes {stable_mosaic.version = 11 : i64} {
  func.func @_stft_mag_kernel(%arg0: i32, %arg1: i32, %arg2: i32, %arg3: memref<1x64x128xbf16, #tpu.memory_space<vmem>>, %arg4: memref<256x64xbf16, #tpu.memory_space<vmem>>, %arg5: memref<1x128x128xbf16, #tpu.memory_space<vmem>>) attributes {dimension_semantics = [#tpu.dimension_semantics<parallel>, #tpu.dimension_semantics<parallel>, #tpu.dimension_semantics<parallel>], iteration_bounds = array<i64: 2, 1, 1>, scalar_prefetch = 0 : i64, scratch_operands = 0 : i64, tpu.core_type = #tpu.core_type<tc>, window_params = [{transform_indices = @transform_0, window_bounds = array<i64: 1, 64, 128>}, {transform_indices = @transform_1, window_bounds = array<i64: 256, 64>}, {transform_indices = @transform_2, window_bounds = array<i64: 1, 128, 128>}]} {
    %c0 = arith.constant 0 : index
    %c0_0 = arith.constant 0 : index
    %0 = vector.load %arg4[%c0, %c0_0] : memref<256x64xbf16, #tpu.memory_space<vmem>>, vector<256x64xbf16>
    %c0_1 = arith.constant 0 : index
    %c0_2 = arith.constant 0 : index
    %c0_3 = arith.constant 0 : index
    %1 = vector.load %arg3[%c0_1, %c0_2, %c0_3] : memref<1x64x128xbf16, #tpu.memory_space<vmem>>, vector<1x64x128xbf16>
    %2 = vector.shape_cast %1 : vector<1x64x128xbf16> to vector<64x128xbf16>
    %cst = arith.constant dense<0.000000e+00> : vector<256x128xf32>
    %3 = tpu.matmul %0, %2, %cst {dimension_numbers = #tpu.dot_dimension_numbers<[1], [0], [0], [1], [0, 0, 1, 1], [], []>} : vector<256x64xbf16>, vector<64x128xbf16>, vector<256x128xf32> -> vector<256x128xf32>
    %4 = vector.extract_strided_slice %3 {offsets = [0, 0], sizes = [128, 128], strides = [1, 1]} : vector<256x128xf32> to vector<128x128xf32>
    %5 = vector.extract_strided_slice %3 {offsets = [128, 0], sizes = [128, 128], strides = [1, 1]} : vector<256x128xf32> to vector<128x128xf32>
    %6 = arith.mulf %4, %4 : vector<128x128xf32>
    %7 = arith.mulf %5, %5 : vector<128x128xf32>
    %8 = arith.addf %6, %7 : vector<128x128xf32>
    %cst_4 = arith.constant 1.000000e-07 : f32
    %9 = vector.broadcast %cst_4 : f32 to vector<128x128xf32>
    %10 = arith.maximumf %8, %9 : vector<128x128xf32>
    %11 = math.sqrt %10 : vector<128x128xf32>
    %12 = arith.truncf %11 : vector<128x128xf32> to vector<128x128xbf16>
    %c0_5 = arith.constant 0 : index
    %c0_6 = arith.constant 0 : index
    %c0_7 = arith.constant 0 : index
    %13 = vector.load %arg5[%c0_5, %c0_6, %c0_7] : memref<1x128x128xbf16, #tpu.memory_space<vmem>>, vector<1x128x128xbf16>
    %14 = vector.shape_cast %13 : vector<1x128x128xbf16> to vector<128x128xbf16>
    %15 = vector.shape_cast %12 : vector<128x128xbf16> to vector<1x128x128xbf16>
    tpu.vector_store %arg5[%c0_5, %c0_6, %c0_7], %15 {strides = array<i32>} : memref<1x128x128xbf16, #tpu.memory_space<vmem>>, vector<1x128x128xbf16>,
    return
  }
  func.func @transform_0(%arg0: i32, %arg1: i32, %arg2: i32) -> (i32, i32, i32) {
    %c0_i32 = arith.constant 0 : i32
    %c0_i32_0 = arith.constant 0 : i32
    return %arg0, %c0_i32, %arg1 : i32, i32, i32
  }
  func.func @transform_1(%arg0: i32, %arg1: i32, %arg2: i32) -> (i32, i32) {
    %c0_i32 = arith.constant 0 : i32
    %c0_i32_0 = arith.constant 0 : i32
    return %arg2, %c0_i32 : i32, i32
  }
  func.func @transform_2(%arg0: i32, %arg1: i32, %arg2: i32) -> (i32, i32, i32) {
    %c0_i32 = arith.constant 0 : i32
    return %arg0, %arg2, %arg1 : i32, i32, i32
  }
}

</mosaic_0001>

<bundles_post_ra>
// kernel: tpu_custom_call.1
= control target key start
LH: loop header
LB: loop body
LE: loop exit
PB: predicated region body
PF: predicated region fallthrough
CT: control target
= control target key end

     0   :  { %7 = vsyncpa [#allocation3], 0  ;;  %s1660_s0 = inlined_call_operand.vmem [shape: bf16[2,64,128], index: 0, kind: input, shape index: {}]   ;;  %s1661_s1 = inlined_call_operand.vmem [shape: bf16[256,64], index: 1, kind: input, shape index: {}]   ;;  %s1662_s2 = inlined_call_operand.hbm [shape: bf16[2,128,128], index: 2, kind: output, shape index: {}]  }
   0x1   :  { %9 = vsyncpa [#allocation3 + $0x1], 0  ;;  %s1331_s9 = smov 0   ;;  %s1333_s10 = smov 0  }
   0x2   :  { %s1335_s11 = smov 0   ;;  %s1337_s12 = smov 0  }
   0x3   :  { %s1339_s13 = smov 0   ;;  %s1341_s14 = smov 0  }
   0x4 LB: > { %s925_s15 = sadd.s32 4294967295, %s1311_s14   ;;  %s926_s16 = sadd.s32 4294967294, %s1311_s14   ;;  %s1311_s14 = sphi %s1341_s14, %s15_s14   ;;  %s1307_s13 = sphi %s1339_s13, %s1669_s13   ;;  %s1303_s12 = sphi %s1337_s12, %s1668_s12   ;;  %s1299_s11 = sphi %s1335_s11, %s1667_s11   ;;  %s1295_s10 = sphi %s1333_s10, %s1666_s10   ;;  %s1291_s9 = sphi %s1331_s9, %s1665_s9  }
   0x5   : > { %s34_s17 = sadd.s32 1, %s1307_s13  ;;  %s99_s18 = sadd.s32 1, %s1299_s11 }
   0x6   : > { %p36_p0 = scmp.ge.s32.totalorder %s34_s17, 2  ;;  %p109_p1 = scmp.ne.s32.totalorder %s1299_s11, %s1295_s10 }
   0x7   : > { %p110_p2 = scmp.eq.s32.totalorder %s925_s15, 1  ;;  %p115_p3 = scmp.ne.s32.totalorder %s1295_s10, %s1291_s9 }
   0x8   : > { %s1671_s17 = smov (%p36_p0, %s34_s17), 0  ;;  %p116_p5 = scmp.eq.s32.totalorder %s926_s16, 1 }
   0x9   : > { %p1371_p4 = por %p110_p2, %p109_p1  ;;  %s92_s20 = ssub.s32 %s1307_s13, %s1671_s17 }
   0xa   : > { %p930_p6 = scmp.ge.s32.totalorder %s1311_s14, 1  ;;  %p97_p7 = scmp.eq.s32.totalorder %s92_s20, 0 }
   0xb   : > { %p1378_p8 = por %p116_p5, %p115_p3  ;;  %p154_p9 = scmp.lt.s32.totalorder %s1311_s14, 3 }
   0xc   : > { %s1384_s22 = scalar_select %p97_p7, %s1299_s11, %s99_s18  }
   0xd   : > { %p155_p10 = pnand %p930_p6, %p154_p9 }
   0xe   : > { %p184_p11 = scmp.lt.s32.totalorder (!%p155_p10), %s1303_s12, 1  ;;  %v1185_v0 = vld [vmem:[%s1661_s1] sm:$0xff] (!%p155_p10)   ;;  %vm344_vm0 = vcmask (!%p155_p10), 523264   ;;  %v1187_v6 = vld [vmem:[%s1661_s1 + $0x8] sm:$0xff] (!%p155_p10)   ;;  %v1189_v8 = vld [vmem:[%s1661_s1 + $0x10] sm:$0xff] (!%p155_p10)   ;;  %s181_s24 = sand.u32 (!%p155_p10), 1, %s1295_s10  }
   0xf   : > { %158 = sbr.rel (%p155_p10) target bundleno = 327 (0x147), region = 28  ;;  %v1186_v1 = vld [vmem:[%s1661_s1 + $0x40] sm:$0xff] (!%p155_p10)   ;;  %1084 = vmatprep.mubr.msk.bf16.mxu0 (!%p155_p10), %vm344_vm0, %v1185_v0  ;;  %v1188_v7 = vld [vmem:[%s1661_s1 + $0x48] sm:$0xff] (!%p155_p10)   ;;  %v1190_v9 = vld [vmem:[%s1661_s1 + $0x50] sm:$0xff] (!%p155_p10)   ;;  %s1499_s25 = sshll.u32 (!%p155_p10), %s181_s24, 6 }
  0x10   : > { %1100 = vmatprep.mubr.msk.bf16.mxu1 (!%p155_p10), %vm344_vm0, %v1186_v1  ;;  %v1191_v10 = vld [vmem:[%s1661_s1 + $0x18] sm:$0xff] (!%p155_p10)   ;;  %v1193_v12 = vld [vmem:[%s1661_s1 + $0x20] sm:$0xff] (!%p155_p10)   ;;  %v1195_v14 = vld [vmem:[%s1661_s1 + $0x28] sm:$0xff] (!%p155_p10)   ;;  %s1524_s26 = scalar_lea.vmem (!%p155_p10), [#allocation2], %s1499_s25  ;;  %s1313_s5 = smov (!%p155_p10), [#allocation2]  }
  0x11   : > { %v1192_v11 = vld [vmem:[%s1661_s1 + $0x58] sm:$0xff] (!%p155_p10)   ;;  %v1194_v13 = vld [vmem:[%s1661_s1 + $0x60] sm:$0xff] (!%p155_p10)   ;;  %v1196_v15 = vld [vmem:[%s1661_s1 + $0x68] sm:$0xff] (!%p155_p10)   ;;  %s1237_s6 = sshll.u32 (!%p155_p10), %s1313_s5, 4  ;;  %s1238_s6 = int_to_ptr.vmem [resolvable:$false] %s1237_s6 }
  0x12   : > { %v1197_v16 = vld [vmem:[%s1661_s1 + $0x30] sm:$0xff] (!%p155_p10)   ;;  %v1199_v18 = vld [vmem:[%s1661_s1 + $0x38] sm:$0xff] (!%p155_p10)   ;;  %s1239_s7 = scalar_lea.vmem (!%p155_p10), %s1238_s6, 2048 }
  0x13   : > { %v1198_v17 = vld [vmem:[%s1661_s1 + $0x70] sm:$0xff] (!%p155_p10)   ;;  %v1200_v19 = vld [vmem:[%s1661_s1 + $0x78] sm:$0xff] (!%p155_p10)  }
  0x16   : > { %s185_s27 = scalar_select %p184_p11, %s1303_s12, 1 }
  0x18   : > { %s991_s28 = sshll.u32 %s185_s27, 5  ;;  %s1008_s27 = sshll.u32 %s1303_s12, 10 }
  0x19   : > { %s191_s3 = scalar_lea.vmem %s1660_s0, %s991_s28  ;;  %s827_s28 = sshll.u32 %s1524_s26, 4  ;;  %s1609_s28 = int_to_ptr.vmem [resolvable:$true] %s827_s28 }
  0x1a   : > { %v1181_v2 = vld [vmem:[%s191_s3] sm:$0xff]   ;;  %v1182_v3 = vld [vmem:[%s191_s3 + $0x8] sm:$0xff]   ;;  %v1183_v4 = vld [vmem:[%s191_s3 + $0x10] sm:$0xff]   ;;  %s1614_s12 = scalar_lea.sflag [#allocation3], %s181_s24  ;;  %s1233_s4 = scalar_lea.vmem %s1609_s28, 1024 }
  0x1b   : > { %1076 = vmatprep.subr.bf16.mxu0 %v1181_v2  ;;  %1116 = vmatprep.subr.bf16.mxu1 %v1181_v2  ;;  %v1184_v5 = vld [vmem:[%s191_s3 + $0x18] sm:$0xff]   ;;  %s1607_s3 = scalar_lea.hbm %s1662_s2, %s1008_s27  ;;  %p1234_p12 = scmp.ne.s32.totalorder %s1609_s28, %s1233_s4 }
  0x1c   : > { %1077 = vmatpush3.bf16.msra.mxu0 %v1181_v2  ;;  %1120 = vmatpush3.bf16.msra.mxu1 %v1181_v2  ;;  %p1240_p1 = scmp.lt.s32.totalorder %s1609_s28, %s1238_s6  ;;  %p1241_p2 = scmp.lt.s32.totalorder %s1239_s7, %s1233_s4 }
  0x1d   : > { %1078 = vmatprep.subr.bf16.mxu0 %v1182_v3  ;;  %1117 = vmatprep.subr.bf16.mxu1 %v1182_v3  ;;  %p1235_p13 = pnand %p1234_p12, %p1371_p4 }
  0x1e   : > { %p1242_p3 = por %p1241_p2, %p1240_p1 }
  0x1f   : > { %p1236_p0 = pneg %p1235_p13 }
  0x20   : > { %1079 = vmatpush3.bf16.msra.mxu0 %v1182_v3  ;;  %1121 = vmatpush3.bf16.msra.mxu1 %v1182_v3 }
  0x21   : > { %1080 = vmatprep.subr.bf16.mxu0 %v1183_v4  ;;  %1118 = vmatprep.subr.bf16.mxu1 %v1183_v4  ;;  %p1243_p5 = pnand %p1242_p3, %p1236_p0 }
  0x24   : > { %1081 = vmatpush3.bf16.msra.mxu0 %v1183_v4  ;;  %1122 = vmatpush3.bf16.msra.mxu1 %v1183_v4 }
  0x25   : > { %1082 = vmatprep.subr.bf16.mxu0 %v1184_v5  ;;  %1119 = vmatprep.subr.bf16.mxu1 %v1184_v5 }
  0x28   : > { %1083 = vmatpush3.bf16.msra.mxu0 %v1184_v5  ;;  %1123 = vmatpush3.bf16.msra.mxu1 %v1184_v5 }
  0x2b   : > { %1085 = vmatmul.mubr.msk.bf16.vlgmr.msra.gmra.mrb[0].mxu0 %vm344_vm0, %v1187_v6  ;;  %1101 = vmatmul.mubr.msk.bf16.vlgmr.msra.gmra.mrb[0].mxu1 %vm344_vm0, %v1188_v7 }
  0x2c   : > { %1088 = vmatprep.mubr.msk.bf16.mxu0 %vm344_vm0, %v1189_v8  ;;  %1104 = vmatprep.mubr.msk.bf16.mxu1 %vm344_vm0, %v1190_v9 }
  0x33   : > { %1089 = vmatmul.mubr.msk.bf16.gmra.mrb[4].mxu0 %vm344_vm0, %v1191_v10  ;;  %1105 = vmatmul.mubr.msk.bf16.gmra.mrb[4].mxu1 %vm344_vm0, %v1192_v11 }
  0x34   : > { %1092 = vmatprep.mubr.msk.bf16.mxu0 %vm344_vm0, %v1193_v12  ;;  %1108 = vmatprep.mubr.msk.bf16.mxu1 %vm344_vm0, %v1194_v13 }
  0x3b   : > { %1093 = vmatmul.mubr.msk.bf16.gmra.mrb[8].mxu0 %vm344_vm0, %v1195_v14  ;;  %1109 = vmatmul.mubr.msk.bf16.gmra.mrb[8].mxu1 %vm344_vm0, %v1196_v15 }
  0x3c   : > { %1096 = vmatprep.mubr.msk.bf16.mxu0 %vm344_vm0, %v1197_v16  ;;  %1112 = vmatprep.mubr.msk.bf16.mxu1 %vm344_vm0, %v1198_v17 }
  0x43   : > { %1097 = vmatmul.mubr.msk.bf16.gmra.mrb[12].mxu0 %vm344_vm0, %v1199_v18  ;;  %1113 = vmatmul.mubr.msk.bf16.gmra.mrb[12].mxu1 %vm344_vm0, %v1200_v19 }
  0xfe   : > { %v1086_v20 = vpop.f32.mrb[0].mxu0  ;;  %v1102_v21 = vpop.f32.mrb[0].mxu1 }
  0xff   : > { %v556_v22 = vmul.f32 %v1086_v20, %v1086_v20  ;;  %v572_v23 = vmul.f32 %v1102_v21, %v1102_v21  ;;  %v427_v24 = vpop.f32.mrb[1].mxu0  ;;  %v491_v25 = vpop.f32.mrb[1].mxu1 }
 0x100   : > { %v554_v26 = vmul.f32 %v427_v24, %v427_v24  ;;  %v570_v27 = vmul.f32 %v491_v25, %v491_v25  ;;  %v1087_v28 = vpop.f32.mrb[2].mxu0  ;;  %v1103_v29 = vpop.f32.mrb[2].mxu1 }
 0x101   : > { %v588_v30 = vadd.f32 %v572_v23, %v556_v22  ;;  %v557_v31 = vmul.f32 %v1087_v28, %v1087_v28  ;;  %v573_v32 = vmul.f32 %v1103_v29, %v1103_v29  ;;  %v430_v33 = vpop.f32.mrb[3].mxu0  ;;  %v494_v34 = vpop.f32.mrb[3].mxu1 }
 0x102   : > { %v586_v35 = vadd.f32 %v570_v27, %v554_v26  ;;  %v555_v36 = vmul.f32 %v430_v33, %v430_v33  ;;  %v571_v37 = vmul.f32 %v494_v34, %v494_v34 }
 0x103   : > { %v1455_v38 = vmax.f32 %v588_v30, 1e-07  ;;  %v589_v39 = vadd.f32 %v573_v32, %v557_v31 }
 0x104   : > { %v1457_v40 = vmax.f32 %v586_v35, 1e-07  ;;  %v587_v41 = vadd.f32 %v571_v37, %v555_v36 }
 0x105   : > { %1201 = vrsqrt.f32 %v1455_v38  ;;  %v1461_v44 = vmax.f32 %v589_v39, 1e-07  ;;  %vm634_vm1 = vcmp.eq.f32.partialorder %v1455_v38, inf  ;;  %vm636_vm2 = vcmp.eq.f32.partialorder %v1455_v38, 0.0 }
 0x106   : > { %1203 = vrsqrt.f32 %v1457_v40  ;;  %v1090_v42 = vpop.f32.mrb[4].mxu0  ;;  %v1106_v43 = vpop.f32.mrb[4].mxu1  ;;  %v1463_v45 = vmax.f32 %v587_v41, 1e-07  ;;  %v637_v5 = vand.u32 2147483648, %v1455_v38  ;;  %vm620_vm3 = vcmp.eq.f32.partialorder %v1457_v40, inf }
 0x107   : > { %v560_v46 = vmul.f32 %v1090_v42, %v1090_v42  ;;  %v576_v47 = vmul.f32 %v1106_v43, %v1106_v43  ;;  %v443_v48 = vpop.f32.mrb[5].mxu0  ;;  %v507_v49 = vpop.f32.mrb[5].mxu1  ;;  %1205 = vrsqrt.f32 %v1461_v44  ;;  %vm622_vm4 = vcmp.eq.f32.partialorder %v1457_v40, 0.0 }
 0x108   : > { %v558_v50 = vmul.f32 %v443_v48, %v443_v48  ;;  %v574_v51 = vmul.f32 %v507_v49, %v507_v49  ;;  %v1091_v52 = vpop.f32.mrb[6].mxu0  ;;  %v1107_v53 = vpop.f32.mrb[6].mxu1  ;;  %1207 = vrsqrt.f32 %v1463_v45  ;;  %v623_v10 = vand.u32 2147483648, %v1457_v40 }
 0x109   : > { %v446_v54 = vpop.f32.mrb[7].mxu0  ;;  %v510_v55 = vpop.f32.mrb[7].mxu1  ;;  %v592_v56 = vadd.f32 %v576_v47, %v560_v46  ;;  %v561_v58 = vmul.f32 %v1091_v52, %v1091_v52  ;;  %v577_v59 = vmul.f32 %v1107_v53, %v1107_v53  ;;  %vm641_vm5 = vcmp.eq.f32.partialorder %v1461_v44, inf }
 0x10a   : > { %v590_v57 = vadd.f32 %v574_v51, %v558_v50  ;;  %v559_v60 = vmul.f32 %v446_v54, %v446_v54  ;;  %v575_v61 = vmul.f32 %v510_v55, %v510_v55  ;;  %vm643_vm6 = vcmp.eq.f32.partialorder %v1461_v44, 0.0 }
 0x10b   : > { %v1467_v62 = vmax.f32 %v592_v56, 1e-07  ;;  %v593_v0 = vadd.f32 %v577_v59, %v561_v58  ;;  %v644_v23 = vand.u32 2147483648, %v1461_v44  ;;  %vm627_vm7 = vcmp.eq.f32.partialorder %v1463_v45, inf }
 0x10c   : > { %v1469_v63 = vmax.f32 %v590_v57, 1e-07  ;;  %v591_v1 = vadd.f32 %v575_v61, %v559_v60  ;;  %vm629_vm8 = vcmp.eq.f32.partialorder %v1463_v45, 0.0  ;;  %v630_v26 = vand.u32 2147483648, %v1463_v45 }
 0x10d   : > { %1209 = vrsqrt.f32 %v1467_v62  ;;  %v1483_v14 = vmax.f32 %v593_v0, 1e-07  ;;  %vm662_vm9 = vcmp.eq.f32.partialorder %v1467_v62, inf  ;;  %vm664_vm10 = vcmp.eq.f32.partialorder %v1467_v62, 0.0 }
 0x10e   : > { %v1094_v2 = vpop.f32.mrb[8].mxu0  ;;  %v1110_v3 = vpop.f32.mrb[8].mxu1  ;;  %1211 = vrsqrt.f32 %v1469_v63  ;;  %v1485_v15 = vmax.f32 %v591_v1, 1e-07  ;;  %v665_v57 = vand.u32 2147483648, %v1467_v62  ;;  %vm648_vm11 = vcmp.eq.f32.partialorder %v1469_v63, inf }
 0x10f   : > { %v1202_v4 = vpop.eup %1201  ;;  %v459_v6 = vpop.f32.mrb[9].mxu0  ;;  %v564_v18 = vmul.f32 %v1094_v2, %v1094_v2  ;;  %v580_v19 = vmul.f32 %v1110_v3, %v1110_v3  ;;  %1213 = vrsqrt.f32 %v1483_v14  ;;  %vm650_vm12 = vcmp.eq.f32.partialorder %v1469_v63, 0.0 }
 0x110   : > { %v523_v7 = vpop.f32.mrb[9].mxu1  ;;  %v1204_v8 = vpop.eup %1203  ;;  %v633_v9 = vmul.f32 %v1202_v4, %v1455_v38  ;;  %v562_v27 = vmul.f32 %v459_v6, %v459_v6  ;;  %1215 = vrsqrt.f32 %v1485_v15  ;;  %v651_v3 = vand.u32 2147483648, %v1469_v63 }
 0x111   : > { %v1095_v11 = vpop.f32.mrb[10].mxu0  ;;  %v1111_v12 = vpop.f32.mrb[10].mxu1  ;;  %v619_v13 = vmul.f32 %v1204_v8, %v1457_v40  ;;  %v596_v32 = vadd.f32 %v580_v19, %v564_v18  ;;  %v578_v33 = vmul.f32 %v523_v7, %v523_v7  ;;  %vm669_vm13 = vcmp.eq.f32.partialorder %v1483_v14, inf }
 0x112   : > { %v462_v16 = vpop.f32.mrb[11].mxu0  ;;  %v635_v17 = vsel %vm634_vm1, %v1455_v38, %v633_v9  ;;  %v526_v20 = vpop.f32.mrb[11].mxu1  ;;  %v565_v38 = vmul.f32 %v1095_v11, %v1095_v11  ;;  %v581_v39 = vmul.f32 %v1111_v12, %v1111_v12  ;;  %vm671_vm14 = vcmp.eq.f32.partialorder %v1483_v14, 0.0 }
 0x113   : > { %v1206_v21 = vpop.eup %1205  ;;  %v621_v22 = vsel %vm620_vm3, %v1457_v40, %v619_v13  ;;  %v638_v28 = vsel %vm636_vm2, %v637_v5, %v635_v17  ;;  %v1521_v46 = vmax.f32 %v596_v32, 1e-07  ;;  %v594_v47 = vadd.f32 %v578_v33, %v562_v27 }
 0x114   : > { %v1208_v24 = vpop.eup %1207  ;;  %v640_v25 = vmul.f32 %v1206_v21, %v1461_v44  ;;  %v624_v30 = vsel %vm622_vm4, %v623_v10, %v621_v22  ;;  %v597_v51 = vadd.f32 %v581_v39, %v565_v38  ;;  %v563_v52 = vmul.f32 %v462_v16, %v462_v16 }
 0x115   : > { %v626_v29 = vmul.f32 %v1208_v24, %v1463_v45  ;;  %v579_v53 = vmul.f32 %v526_v20, %v526_v20  ;;  %1217 = vrsqrt.f32 %v1521_v46  ;;  %v1534_v59 = vmax.f32 %v594_v47, 1e-07 }
 0x116   : > { %v642_v31 = vsel %vm641_vm5, %v1461_v44, %v640_v25  ;;  %v1098_v34 = vpop.f32.mrb[12].mxu0  ;;  %v1114_v35 = vpop.f32.mrb[12].mxu1  ;;  %v1536_v60 = vmax.f32 %v597_v51, 1e-07  ;;  %v672_v6 = vand.u32 2147483648, %v1483_v14  ;;  %vm655_vm15 = vcmp.eq.f32.partialorder %v1485_v15, inf }
 0x117   : > { %v645_v36 = vsel %vm643_vm6, %v644_v23, %v642_v31  ;;  %v628_v37 = vsel %vm627_vm7, %v1463_v45, %v626_v29  ;;  %v475_v41 = vpop.f32.mrb[13].mxu0  ;;  %v539_v40 = vpop.f32.mrb[13].mxu1  ;;  %v595_v61 = vadd.f32 %v579_v53, %v563_v52  ;;  %v568_v0 = vmul.f32 %v1098_v34, %v1098_v34 }
 0x118   : > { %v1017_v42 = vpack.c.bf16 %v645_v36, %v638_v28  ;;  %v631_v43 = vsel %vm629_vm8, %v630_v26, %v628_v37  ;;  %v1099_v48 = vpop.f32.mrb[14].mxu0  ;;  %v1115_v49 = vpop.f32.mrb[14].mxu1  ;;  %v584_v1 = vmul.f32 %v1114_v35, %v1114_v35  ;;  %1219 = vrsqrt.f32 %v1534_v59 }
 0x119   : > { %v1210_v44 = vpop.eup %1209  ;;  %v1012_v50 = vpack.c.bf16 %v631_v43, %v624_v30  ;;  %v478_v54 = vpop.f32.mrb[15].mxu0  ;;  %vm657_vm0 = vcmp.eq.f32.partialorder %v1485_v15, 0.0  ;;  %v658_v9 = vand.u32 2147483648, %v1485_v15  ;;  %1221 = vrsqrt.f32 %v1536_v60 }
 0x11a   : > { %v542_v55 = vpop.f32.mrb[15].mxu1  ;;  %v1212_v56 = vpop.eup %1211  ;;  %1049 = vst [vmem:[%s1524_s26 + $0x8] sm:$0xff] %v1017_v42   ;;  %v661_v45 = vmul.f32 %v1210_v44, %v1467_v62  ;;  %v611_v12 = vmax.f32 %v595_v61, 1e-07  ;;  %v600_v13 = vadd.f32 %v584_v1, %v568_v0  ;;  %v566_v18 = vmul.f32 %v475_v41, %v475_v41 }
 0x11b   : > { %1013 = vst [vmem:[%s1524_s26] sm:$0xff] %v1012_v50   ;;  %v647_v58 = vmul.f32 %v1212_v56, %v1469_v63  ;;  %v1214_v2 = vpop.eup %1213  ;;  %v582_v19 = vmul.f32 %v539_v40, %v539_v40  ;;  %v569_v22 = vmul.f32 %v1099_v48, %v1099_v48  ;;  %v585_v27 = vmul.f32 %v1115_v49, %v1115_v49 }
 0x11c   : > { %v663_v4 = vsel %vm662_vm9, %v1467_v62, %v661_v45  ;;  %v668_v5 = vmul.f32 %v1214_v2, %v1483_v14  ;;  %v1216_v7 = vpop.eup %1215  ;;  %1223 = vrsqrt.f32 %v611_v12  ;;  %v1566_v25 = vmax.f32 %v600_v13, 1e-07 }
 0x11d   : > { %v649_v8 = vsel %vm648_vm11, %v1469_v63, %v647_v58  ;;  %v654_v11 = vmul.f32 %v1216_v7, %v1485_v15  ;;  %v666_v16 = vsel %vm664_vm10, %v665_v57, %v663_v4  ;;  %v598_v26 = vadd.f32 %v582_v19, %v566_v18 }
 0x11e   : > { %v670_v10 = vsel %vm669_vm13, %v1483_v14, %v668_v5  ;;  %v652_v23 = vsel %vm650_vm12, %v651_v3, %v649_v8  ;;  %1225 = vrsqrt.f32 %v1566_v25  ;;  %v567_v28 = vmul.f32 %v478_v54, %v478_v54 }
 0x11f   : > { %v673_v17 = vsel %vm671_vm14, %v672_v6, %v670_v10  ;;  %v656_v21 = vsel %vm655_vm15, %v1485_v15, %v654_v11  ;;  %v1218_v62 = vpop.eup %1217  ;;  %v1572_v30 = vmax.f32 %v598_v26, 1e-07  ;;  %v601_v63 = vadd.f32 %v585_v27, %v569_v22 }
 0x120   : > { %v1027_v20 = vpack.c.bf16 %v673_v17, %v666_v16  ;;  %v659_v24 = vsel %vm657_vm0, %v658_v9, %v656_v21  ;;  %v689_v29 = vmul.f32 %v1218_v62, %v1521_v46  ;;  %v583_v31 = vmul.f32 %v542_v55, %v542_v55 }
 0x121   : > { %v1022_v14 = vpack.c.bf16 %v659_v24, %v652_v23  ;;  %1227 = vrsqrt.f32 %v1572_v30  ;;  %vm690_vm1 = vcmp.eq.f32.partialorder %v1521_v46, inf  ;;  %v617_v34 = vmax.f32 %v601_v63, 1e-07 }
 0x122   : > { %1051 = vst [vmem:[%s1524_s26 + $0x18] sm:$0xff] %v1027_v20   ;;  %v1220_v32 = vpop.eup %1219  ;;  %v599_v35 = vadd.f32 %v583_v31, %v567_v28  ;;  %v691_v36 = vsel %vm690_vm1, %v1521_v46, %v689_v29  ;;  %vm692_vm2 = vcmp.eq.f32.partialorder %v1521_v46, 0.0  ;;  %v693_v37 = vand.u32 2147483648, %v1521_v46 }
 0x123   : > { %1050 = vst [vmem:[%s1524_s26 + $0x10] sm:$0xff] %v1022_v14   ;;  %v1222_v15 = vpop.eup %1221  ;;  %v675_v33 = vmul.f32 %v1220_v32, %v1534_v59  ;;  %vm676_vm3 = vcmp.eq.f32.partialorder %v1534_v59, inf  ;;  %vm697_vm4 = vcmp.eq.f32.partialorder %v1536_v60, inf  ;;  %v700_v39 = vand.u32 2147483648, %v1536_v60 }
 0x124   : > { %v696_v38 = vmul.f32 %v1222_v15, %v1536_v60  ;;  %1229 = vrsqrt.f32 %v617_v34  ;;  %v679_v40 = vand.u32 2147483648, %v1534_v59  ;;  %vm699_vm5 = vcmp.eq.f32.partialorder %v1536_v60, 0.0 }
 0x125   : > { %v615_v43 = vmax.f32 %v599_v35, 1e-07  ;;  %v694_v47 = vsel %vm692_vm2, %v693_v37, %v691_v36  ;;  %v677_v46 = vsel %vm676_vm3, %v1534_v59, %v675_v33  ;;  %vm683_vm6 = vcmp.eq.f32.partialorder %v611_v12, inf }
 0x126   : > { %v1224_v41 = vpop.eup %1223  ;;  %v698_v42 = vsel %vm697_vm4, %v1536_v60, %v696_v38  ;;  %v686_v50 = vand.u32 2147483648, %v611_v12  ;;  %vm678_vm7 = vcmp.eq.f32.partialorder %v1534_v59, 0.0  ;;  %vm685_vm8 = vcmp.eq.f32.partialorder %v611_v12, 0.0 }
 0x127   : > { %v701_v48 = vsel %vm699_vm5, %v700_v39, %v698_v42  ;;  %v682_v49 = vmul.f32 %v1224_v41, %v611_v12  ;;  %1231 = vrsqrt.f32 %v615_v43  ;;  %v680_v53 = vsel %vm678_vm7, %v679_v40, %v677_v46 }
 0x128   : > { %v1037_v44 = vpack.c.bf16 %v701_v48, %v694_v47  ;;  %v1226_v51 = vpop.eup %1225  ;;  %vm718_vm9 = vcmp.eq.f32.partialorder %v1566_v25, inf  ;;  %v721_v61 = vand.u32 2147483648, %v1566_v25  ;;  %vm725_vm10 = vcmp.eq.f32.partialorder %v617_v34, inf }
 0x129   : > { %v684_v52 = vsel %vm683_vm6, %v611_v12, %v682_v49  ;;  %v717_v45 = vmul.f32 %v1226_v51, %v1566_v25  ;;  %v728_v0 = vand.u32 2147483648, %v617_v34  ;;  %vm720_vm11 = vcmp.eq.f32.partialorder %v1566_v25, 0.0 }
 0x12a   : > { %1053 = vst [vmem:[%s1524_s26 + $0x28] sm:$0xff] %v1037_v44   ;;  %v687_v54 = vsel %vm685_vm8, %v686_v50, %v684_v52  ;;  %vm704_vm12 = vcmp.eq.f32.partialorder %v1572_v30, inf  ;;  %vm727_vm13 = vcmp.eq.f32.partialorder %v617_v34, 0.0  ;;  %v707_v7 = vand.u32 2147483648, %v1572_v30 }
 0x12b   : > { %v1032_v55 = vpack.c.bf16 %v687_v54, %v680_v53  ;;  %v1228_v56 = vpop.eup %1227  ;;  %v719_v60 = vsel %vm718_vm9, %v1566_v25, %v717_v45  ;;  %vm711_vm14 = vcmp.eq.f32.partialorder %v615_v43, inf  ;;  %v714_v9 = vand.u32 2147483648, %v615_v43 }
 0x12c   : > { %v703_v58 = vmul.f32 %v1228_v56, %v1572_v30  ;;  %v722_v3 = vsel %vm720_vm11, %v721_v61, %v719_v60  ;;  %vm706_vm15 = vcmp.eq.f32.partialorder %v1572_v30, 0.0  ;;  %vm713_vm0 = vcmp.eq.f32.partialorder %v615_v43, 0.0 }
 0x12d   : > { %1052 = vst [vmem:[%s1524_s26 + $0x20] sm:$0xff] %v1032_v55  }
 0x12e   : > { %v1230_v57 = vpop.eup %1229  ;;  %v705_v4 = vsel %vm704_vm12, %v1572_v30, %v703_v58 }
 0x12f   : > { %v724_v59 = vmul.f32 %v1230_v57, %v617_v34  ;;  %v708_v11 = vsel %vm706_vm15, %v707_v7, %v705_v4 }
 0x131   : > { %v1232_v1 = vpop.eup %1231  ;;  %v726_v2 = vsel %vm725_vm10, %v617_v34, %v724_v59 }
 0x132   : > { %v729_v5 = vsel %vm727_vm13, %v728_v0, %v726_v2  ;;  %v710_v6 = vmul.f32 %v1232_v1, %v615_v43 }
 0x133   : > { %v1047_v8 = vpack.c.bf16 %v729_v5, %v722_v3 }
 0x134   : > { %v712_v10 = vsel %vm711_vm14, %v615_v43, %v710_v6 }
 0x135   : > { %1055 = vst [vmem:[%s1524_s26 + $0x38] sm:$0xff] %v1047_v8   ;;  %v715_v12 = vsel %vm713_vm0, %v714_v9, %v712_v10 }
 0x136   : > { %v1042_v13 = vpack.c.bf16 %v715_v12, %v708_v11 }
 0x138   : > { %1054 = vst [vmem:[%s1524_s26 + $0x30] sm:$0xff] %v1042_v13  }
 0x139   : > { %1246 = shalt.err (!%p1243_p5)
}
 0x13a   : > { %s1247_s8 = scalar_lea.hbm %s1607_s3, 1024  ;;  %s1251_s18 = scalar_lea.hbm %s1662_s2, 2048 }
 0x13b   : > { %p1248_p6 = scmp.ne.s32.totalorder %s1607_s3, %s1247_s8  ;;  %p1252_p10 = scmp.lt.u32.totalorder %s1607_s3, %s1662_s2 }
 0x13c   : > { %p1253_p11 = scmp.lt.u32.totalorder %s1251_s18, %s1247_s8  ;;  %p1255_p13 = scmp.lt.u32.totalorder %s1247_s8, %s1607_s3 }
 0x13d   : > { %p1249_p7 = pnand %p1248_p6, %p1371_p4 }
 0x13e   : > { %p1254_p12 = por %p1253_p11, %p1252_p10 }
 0x13f   : > { %p1250_p9 = pneg %p1249_p7 }
 0x140   : > { %p1256_p0 = por %p1255_p13, %p1254_p12 }
 0x142   : > { %p1257_p1 = pnand %p1256_p0, %p1250_p9 }
 0x144   : > { %1260 = shalt.err (!%p1257_p1)
}
 0x145   : > { %s1314_s24 = smov 64   ;;  %s1315_s25 = smov 4  }
 0x146   : > { %1124 = dma.vmem_to_hbm [thread:$0]  (%p1371_p4), %s1609_s28, 1024, %s1607_s3, %s1614_s12, %s1314_s24, %s1314_s24, %s1315_s25  }
 0x147 PF: > { %p1130_p2 = scmp.ge.s32.totalorder %s1311_s14, 2  ;;  %s842_s26 = sand.u32 1, %s1291_s9  }
 0x148   : > { %s843_s27 = scalar_lea.sflag [#allocation3], %s842_s26 }
 0x149   : > { %p1127_p3 = pnand %p1130_p2, %p1378_p8 }
 0x14b   : > { %1286 = dma.done.wait (!%p1127_p3), %s843_s27, 1024  }
 0x14c   : > { %1288 = vsyncadd (!%p1127_p3), %s843_s27, 4294966272  ;;  %s15_s14 = sadd.s32 1, %s1311_s14   ;;  %s1665_s9 = smov %s1295_s10 }
 0x14d   : > { %p12_p5 = scmp.ge.s32.totalorder %s15_s14, 4   ;;  %s1666_s10 = smov %s1299_s11 }
 0x14e   : > { %s1667_s11 = smov %s1384_s22  ;;  %s1668_s12 = smov %s1307_s13 }
 0x14f   : > { %s1669_s13 = smov %s1671_s17  ;;  %14 = sbr.rel (!%p12_p5) target bundleno = 4 (0x4), region = 66 }
 0x156   :  { %848 = vsyncpa [#allocation3], 1 }
 0x157   :  { %850 = vsyncpa [#allocation3 + $0x1], 1 }

</bundles_post_ra>
